<compile_context>
chip_gen: v5e
topology: v5e:2x2
jax: 0.10.0
libtpu: 0.0.40
codegen_flags: <defaults>
</compile_context>

<pallas_src>
import jax
import jax.numpy as jnp
from jax.experimental import pallas as pl
from jax.experimental.pallas import tpu as pltpu


def _identity_kernel(x_ref, o_ref):
    # Pure identity. The reference module's `permute(0, 2, 1)` result is dead
    # code and intentionally not re-emitted here.
    o_ref[...] = x_ref[...]


def model_forward(x1):
    """Pallas equivalent of Model.forward (identity on x1)."""
    return pl.pallas_call(
        _identity_kernel,
        out_shape=jax.ShapeDtypeStruct(x1.shape, x1.dtype),
        in_specs=[pl.BlockSpec(memory_space=pltpu.MemorySpace.VMEM)],
        out_specs=pl.BlockSpec(memory_space=pltpu.MemorySpace.VMEM),
        # Output aliases the input buffer: no new HBM allocation, no writeback
        # beyond the (tiny) aliased block.
        input_output_aliases={0: 0},
    )(x1)


if __name__ == "__main__":
    key = jax.random.PRNGKey(0)

    # Input consistent with the module: x1 = torch.randn(1, 2, 2)
    x1 = jax.random.normal(key, (1, 2, 2), dtype=jnp.float32)

    # Snapshot the expected values on host BEFORE calling the kernel, since
    # the input buffer is aliased/donated to the output.
    expected = jax.device_get(x1)

    out = model_forward(x1)
    out = jax.block_until_ready(out)

    # Correctness check: forward is identity on x1.
    assert out.shape == expected.shape
    assert jnp.allclose(out, expected)

    print("KERNEL_OK")
</pallas_src>

<mosaic_0001>
module attributes {stable_mosaic.version = 11 : i64} {
  func.func @_identity_kernel(%arg0: memref<1x2x2xf32, #tpu.memory_space<vmem>>, %arg1: memref<1x2x2xf32, #tpu.memory_space<vmem>>) attributes {dimension_semantics = [], scalar_prefetch = 0 : i64, scratch_operands = 0 : i64, tpu.core_type = #tpu.core_type<tc>} {
    %c0 = arith.constant 0 : index
    %c0_0 = arith.constant 0 : index
    %c0_1 = arith.constant 0 : index
    %0 = vector.load %arg0[%c0, %c0_0, %c0_1] : memref<1x2x2xf32, #tpu.memory_space<vmem>>, vector<1x2x2xf32>
    %c0_2 = arith.constant 0 : index
    %c0_3 = arith.constant 0 : index
    %c0_4 = arith.constant 0 : index
    %1 = vector.load %arg1[%c0_2, %c0_3, %c0_4] : memref<1x2x2xf32, #tpu.memory_space<vmem>>, vector<1x2x2xf32>
    tpu.vector_store %arg1[%c0_2, %c0_3, %c0_4], %0 {strides = array<i32>} : memref<1x2x2xf32, #tpu.memory_space<vmem>>, vector<1x2x2xf32>,
    return
  }
}

</mosaic_0001>

<bundles_post_ra>
// kernel: tpu_custom_call.1
= control target key start
LH: loop header
LB: loop body
LE: loop exit
PB: predicated region body
PF: predicated region fallthrough
CT: control target
= control target key end

     0   :  { %6 = vsyncpa [#allocation3], 0  ;;  %s115_s0 = inlined_call_operand.hbm [shape: f32[1,2,2], index: 0, kind: input, shape index: {}, may-alias: {0,1}]   ;;  %s116_s1 = inlined_call_operand.hbm [shape: f32[1,2,2], index: 1, kind: output, shape index: {}, may-alias: {0,1}]  }
   0x1   :  { %7 = vsyncpa [#allocation4], 0  ;;  %s13_s8 = sshll.u32 %s115_s0, 4  ;;  %s97_s9 = smov [#allocation2]   ;;  %s14_s8 = int_to_ptr.hbm [resolvable:$true] %s13_s8 }
   0x2   :  { %s15_s10 = sshll.u32 %s97_s9, 4  ;;  %s16_s10 = int_to_ptr.vmem [resolvable:$true] %s15_s10 }
   0x3   :  { %18 = dma.hbm_to_vmem [thread:$0]  %s14_s8, 32, %s16_s10, [#allocation3]  }
   0x4   :  { %93 = dma.done.wait [#allocation3], 32  }
   0x5   :  { %94 = vsyncadd [#allocation3], 4294967264  ;;  %s98_s11 = smov [#allocation5]   ;;  %s33_s15 = sshll.u32 %s116_s1, 4  ;;  %vm24_vm0 = vcmask 9216   ;;  %s34_s15 = int_to_ptr.hbm [resolvable:$true] %s33_s15 }
   0x6   :  { %s31_s12 = sshll.u32 %s98_s11, 4  ;;  %v23_v0 = vld [vmem:[#allocation2] sm:$0x3]  ;;  %s32_s12 = int_to_ptr.vmem [resolvable:$true] %s31_s12 }
   0x7   :  { %25 = vst.msk [vmem:[#allocation5] sm:$0x3] %vm24_vm0, %v23_v0 }
   0x8   :  { %36 = dma.vmem_to_hbm [thread:$0]  %s32_s12, 32, %s34_s15, [#allocation4]  }
   0x9   :  { %95 = dma.done.wait [#allocation4], 32  }
   0xa   :  { %96 = vsyncadd [#allocation4], 4294967264 }
   0xb   :  { %41 = vsyncpa [#allocation3], 1 }
   0xc   :  { %42 = vsyncpa [#allocation4], 1 }

</bundles_post_ra>
